<compile_context>
chip_gen: v7x
topology: tpu7x:2x2x1
jax: 0.10.0
libtpu: 0.0.40
codegen_flags: <defaults>
</compile_context>

<pallas_src>
import functools
import math

import jax
import jax.numpy as jnp
from jax.experimental import pallas as pl
from jax.experimental.pallas import tpu as pltpu


# ---------------------------------------------------------------------------
# Config (mirrors the PyTorch module's __init__ bookkeeping)
# ---------------------------------------------------------------------------
CONFIG = {
    "historic_sequence_length": 16,
    "forecast_sequence_length": 8,
    "dropout_rate": 0.0,          # inference: dropout == identity
    "hidden_size": 32,
    "hidden_layers": 2,
    "static_size": 4,
    "data_keys": ["historic", "future", "static"],
}

SUBLANE = 8
DEFAULT_BATCH_TILE = 2048         # max rows per grid step (multiple of 8)
USE_BF16_MATMUL = True            # bf16 MXU operands; accumulate/elementwise in f32


def _round_up(x, m):
    return ((x + m - 1) // m) * m


def compute_in_features(config):
    in_features = config["historic_sequence_length"]
    out_size = config["forecast_sequence_length"]
    for key in config["data_keys"]:
        if key == "future":
            in_features += out_size
        if key == "Weekday_future_one_hot":
            in_features += 7 * out_size
        if key == "Hour_future_one_hot":
            in_features += 24 * out_size
        if key == "Weekday_historic_one_hot":
            in_features += 7 * in_features
        if key == "Hour_historic_one_hot":
            in_features += 24 * in_features
        if key == "static":
            in_features += config["static_size"]
    return in_features


# ---------------------------------------------------------------------------
# Pallas kernel: fused input layer + ReLU + hidden stack + output layer.
# Refs (hidden_layers > 0): x, w_in, b_in, w_h, b_h, w_out, b_out, out
# Refs (hidden_layers == 0): x, w_in, b_in, w_out, b_out, out
# ---------------------------------------------------------------------------
def mlp_kernel(*refs, hidden_layers):
    if hidden_layers > 0:
        (x_ref, w_in_ref, b_in_ref, w_h_ref, b_h_ref,
         w_out_ref, b_out_ref, o_ref) = refs
    else:
        x_ref, w_in_ref, b_in_ref, w_out_ref, b_out_ref, o_ref = refs
        w_h_ref = b_h_ref = None

    dot_dtype = w_in_ref.dtype   # bf16 (or f32 if USE_BF16_MATMUL is off)

    # Input layer: single (tb, in_features) x (in_features, H) dot, f32 accumulate.
    h = jnp.dot(x_ref[...].astype(dot_dtype), w_in_ref[...],
                preferred_element_type=jnp.float32)
    # first_dropout == identity (inference); bias + ReLU in f32.
    h = jnp.maximum(h + b_in_ref[...], 0.0)

    # Hidden stack: Linear -> (identity dropout) -> ReLU, statically unrolled.
    for layer in range(hidden_layers):
        z = jnp.dot(h.astype(dot_dtype), w_h_ref[layer],
                    preferred_element_type=jnp.float32)
        h = jnp.maximum(z + b_h_ref[layer], 0.0)

    # Output layer (no lane padding -- last dim equals the full array dim).
    out = jnp.dot(h.astype(dot_dtype), w_out_ref[...],
                  preferred_element_type=jnp.float32)
    o_ref[...] = out + b_out_ref[...]


# ---------------------------------------------------------------------------
# Wrapper
# ---------------------------------------------------------------------------
def _const_map(ndim):
    if ndim == 2:
        return lambda i: (0, 0)
    return lambda i: (0, 0, 0)


def _choose_tiling(batch, batch_tile):
    """Pick (tb, pad_b, n_tiles): tb multiple of 8, capped at batch_tile,
    balanced against padding waste, and >= 2 grid steps when there are enough
    rows (so both v7x TensorCores get work)."""
    pad_b_min = _round_up(batch, SUBLANE)
    n_tiles = max(pl.cdiv(pad_b_min, batch_tile), 1)
    if n_tiles < 2 and pad_b_min > SUBLANE:
        n_tiles = 2                       # guarantee >=2 steps for megacore
    tb = _round_up(pl.cdiv(pad_b_min, n_tiles), SUBLANE)
    pad_b = tb * n_tiles
    return tb, pad_b, n_tiles


def mlp_forward(x_cat, kparams, *, hidden_layers, output_size,
                batch_tile=DEFAULT_BATCH_TILE):
    B, in_features = x_cat.shape
    hidden_size = int(kparams["b_in"].shape[-1])

    tb, pad_b, n_tiles = _choose_tiling(B, batch_tile)
    if pad_b != B:
        x_cat = jnp.pad(x_cat, ((0, pad_b - B), (0, 0)))
    grid = (n_tiles,)

    weights = [kparams["w_in"], kparams["b_in"]]
    if hidden_layers > 0:
        weights += [kparams["w_h"], kparams["b_h"]]
    weights += [kparams["w_out"], kparams["b_out"]]

    in_specs = (
        # batch-blocked input (pipelined HBM<->VMEM per grid step)
        [pl.BlockSpec((tb, in_features), lambda i: (i, 0))]
        # full-shape, constant-index weights/biases: DMA'd once, VMEM-resident
        + [pl.BlockSpec(w.shape, _const_map(w.ndim)) for w in weights]
    )
    out_specs = pl.BlockSpec((tb, output_size), lambda i: (i, 0))

    flops = 2 * pad_b * (in_features * hidden_size
                         + hidden_layers * hidden_size * hidden_size
                         + hidden_size * output_size)
    weight_bytes = sum(int(w.size) * w.dtype.itemsize for w in weights)
    bytes_accessed = (pad_b * in_features * 4        # x_cat reads
                      + pad_b * output_size * 4      # unpadded output writes
                      + weight_bytes)
    cost = pl.CostEstimate(flops=flops, transcendentals=0,
                           bytes_accessed=bytes_accessed)

    kernel = functools.partial(mlp_kernel, hidden_layers=hidden_layers)

    out_padded = pl.pallas_call(
        kernel,
        out_shape=jax.ShapeDtypeStruct((pad_b, output_size), jnp.float32),
        grid=grid,
        in_specs=in_specs,
        out_specs=out_specs,
        compiler_params=pltpu.CompilerParams(
            dimension_semantics=("parallel",),          # megacore-shard on v7x
            vmem_limit_bytes=32 * 1024 * 1024,          # safe on v7x's 64 MiB VMEM
        ),
        cost_estimate=cost,
    )(x_cat, *weights)

    return out_padded[:B, :]


# ---------------------------------------------------------------------------
# Parameter init (PyTorch nn.Linear default: U(-1/sqrt(in), +1/sqrt(in)))
# ---------------------------------------------------------------------------
def init_params(key, in_features, hidden_size, hidden_layers, output_size):
    ks = jax.random.split(key, 6)

    def linear(kw, kb, fan_in, fan_out):
        bound = 1.0 / math.sqrt(fan_in)
        w = jax.random.uniform(kw, (fan_in, fan_out), jnp.float32, -bound, bound)
        b = jax.random.uniform(kb, (1, fan_out), jnp.float32, -bound, bound)
        return w, b

    w_in, b_in = linear(ks[0], ks[1], in_features, hidden_size)
    w_out, b_out = linear(ks[2], ks[3], hidden_size, output_size)

    n_h = max(hidden_layers, 1)  # keep arrays non-empty even if hidden_layers == 0
    kw_h = jax.random.split(ks[4], n_h)
    kb_h = jax.random.split(ks[5], n_h)
    bound = 1.0 / math.sqrt(hidden_size)
    w_h = jnp.stack([
        jax.random.uniform(kw_h[i], (hidden_size, hidden_size), jnp.float32, -bound, bound)
        for i in range(n_h)
    ])                                                       # [L, H, H]
    b_h = jnp.stack([
        jax.random.uniform(kb_h[i], (1, hidden_size), jnp.float32, -bound, bound)
    for i in range(n_h)
    ])                                                       # [L, 1, H]

    return {"w_in": w_in, "b_in": b_in, "w_h": w_h, "b_h": b_h,
            "w_out": w_out, "b_out": b_out}


def prepare_kernel_params(params):
    """Cast MXU operands to bf16; biases stay f32 (VPU path)."""
    dot_dtype = jnp.bfloat16 if USE_BF16_MATMUL else jnp.float32
    return {
        "w_in": params["w_in"].astype(dot_dtype),
        "b_in": params["b_in"],
        "w_h": params["w_h"].astype(dot_dtype),
        "b_h": params["b_h"],
        "w_out": params["w_out"].astype(dot_dtype),
        "b_out": params["b_out"],
    }


# ---------------------------------------------------------------------------
# Pure-JAX reference (mirrors the PyTorch forward, with the same bf16 MXU casts)
# ---------------------------------------------------------------------------
def mlp_ref(x_cat, params, hidden_layers):
    dot_dtype = jnp.bfloat16 if USE_BF16_MATMUL else jnp.float32

    def dot(a, w):
        return jnp.dot(a.astype(dot_dtype), w.astype(dot_dtype),
                       preferred_element_type=jnp.float32)

    h = jnp.maximum(dot(x_cat, params["w_in"]) + params["b_in"], 0.0)
    for layer in range(hidden_layers):
        h = jnp.maximum(dot(h, params["w_h"][layer]) + params["b_h"][layer], 0.0)
    return dot(h, params["w_out"]) + params["b_out"]


if __name__ == "__main__":
    cfg = CONFIG
    in_features = compute_in_features(cfg)       # 16 + 8 + 4 = 28
    hidden_size = cfg["hidden_size"]
    hidden_layers = cfg["hidden_layers"]
    output_size = cfg["forecast_sequence_length"]
    batch = 2

    key = jax.random.PRNGKey(0)
    k_data, k_params = jax.random.split(key)
    kh, kf, ks = jax.random.split(k_data, 3)

    # Input dict matching data_keys (as in the PyTorch forward)
    x = {
        "historic": jax.random.normal(kh, (batch, cfg["historic_sequence_length"]),
                                      jnp.float32),
        "future": jax.random.normal(kf, (batch, cfg["forecast_sequence_length"]),
                                    jnp.float32),
        "static": jax.random.normal(ks, (batch, cfg["static_size"]), jnp.float32),
    }
    # torch.cat([x[key].reshape(B, -1) for key in data_keys], dim=-1)
    x_cat = jnp.concatenate([x[k].reshape(batch, -1) for k in cfg["data_keys"]],
                            axis=-1)
    assert x_cat.shape == (batch, in_features)

    params = init_params(k_params, in_features, hidden_size, hidden_layers,
                         output_size)
    kparams = prepare_kernel_params(params)

    out = mlp_forward(x_cat, kparams, hidden_layers=hidden_layers,
                      output_size=output_size)
    out = jax.block_until_ready(out)
    assert out.shape == (batch, output_size)

    ref = mlp_ref(x_cat, params, hidden_layers)
    assert jnp.allclose(out, ref, atol=1e-3, rtol=1e-3), "mismatch vs reference (B=2)"

    # Larger, non-tile-aligned batch exercises the multi-step batched grid + padding.
    batch2 = 300
    kb = jax.random.fold_in(k_data, 7)
    x2_cat = jax.random.normal(kb, (batch2, in_features), jnp.float32)
    out2 = jax.block_until_ready(
        mlp_forward(x2_cat, kparams, hidden_layers=hidden_layers,
                    output_size=output_size))
    ref2 = mlp_ref(x2_cat, params, hidden_layers)
    assert out2.shape == (batch2, output_size)
    assert jnp.allclose(out2, ref2, atol=1e-3, rtol=1e-3), "mismatch vs reference (B=300)"

    print("KERNEL_OK")
</pallas_src>

<mosaic_0001>
module attributes {stable_mosaic.version = 11 : i64} {
  func.func @mlp_kernel(%arg0: i32, %arg1: memref<8x28xf32, #tpu.memory_space<vmem>>, %arg2: memref<28x32xbf16, #tpu.memory_space<vmem>>, %arg3: memref<1x32xf32, #tpu.memory_space<vmem>>, %arg4: memref<2x32x32xbf16, #tpu.memory_space<vmem>>, %arg5: memref<2x1x32xf32, #tpu.memory_space<vmem>>, %arg6: memref<32x8xbf16, #tpu.memory_space<vmem>>, %arg7: memref<1x8xf32, #tpu.memory_space<vmem>>, %arg8: memref<8x8xf32, #tpu.memory_space<vmem>>) attributes {dimension_semantics = [#tpu.dimension_semantics<parallel>], iteration_bounds = array<i64: 1>, scalar_prefetch = 0 : i64, scratch_operands = 0 : i64, tpu.core_type = #tpu.core_type<tc>, window_params = [{transform_indices = @transform_0, window_bounds = array<i64: 8, 28>}, {pipeline_mode = #tpu.pipeline_mode<synchronous>, transform_indices = @transform_1, window_bounds = array<i64: 28, 32>}, {pipeline_mode = #tpu.pipeline_mode<synchronous>, transform_indices = @transform_2, window_bounds = array<i64: 1, 32>}, {pipeline_mode = #tpu.pipeline_mode<synchronous>, transform_indices = @transform_3, window_bounds = array<i64: 2, 32, 32>}, {pipeline_mode = #tpu.pipeline_mode<synchronous>, transform_indices = @transform_4, window_bounds = array<i64: 2, 1, 32>}, {pipeline_mode = #tpu.pipeline_mode<synchronous>, transform_indices = @transform_5, window_bounds = array<i64: 32, 8>}, {pipeline_mode = #tpu.pipeline_mode<synchronous>, transform_indices = @transform_6, window_bounds = array<i64: 1, 8>}, {transform_indices = @transform_7, window_bounds = array<i64: 8, 8>}]} {
    %c0 = arith.constant 0 : index
    %c0_0 = arith.constant 0 : index
    %0 = vector.load %arg1[%c0, %c0_0] : memref<8x28xf32, #tpu.memory_space<vmem>>, vector<8x28xf32>
    %1 = arith.truncf %0 : vector<8x28xf32> to vector<8x28xbf16>
    %c0_1 = arith.constant 0 : index
    %c0_2 = arith.constant 0 : index
    %2 = vector.load %arg2[%c0_1, %c0_2] : memref<28x32xbf16, #tpu.memory_space<vmem>>, vector<28x32xbf16>
    %cst = arith.constant dense<0.000000e+00> : vector<8x32xf32>
    %3 = tpu.matmul %1, %2, %cst {dimension_numbers = #tpu.dot_dimension_numbers<[1], [0], [0], [1], [0, 0, 1, 1], [], []>} : vector<8x28xbf16>, vector<28x32xbf16>, vector<8x32xf32> -> vector<8x32xf32>
    %c0_3 = arith.constant 0 : index
    %c0_4 = arith.constant 0 : index
    %4 = vector.load %arg3[%c0_3, %c0_4] : memref<1x32xf32, #tpu.memory_space<vmem>>, vector<1x32xf32>
    %5 = vector.broadcast %4 : vector<1x32xf32> to vector<8x32xf32>
    %6 = arith.addf %3, %5 : vector<8x32xf32>
    %cst_5 = arith.constant 0.000000e+00 : f32
    %7 = vector.broadcast %cst_5 : f32 to vector<8x32xf32>
    %8 = arith.maximumf %6, %7 : vector<8x32xf32>
    %9 = arith.truncf %8 : vector<8x32xf32> to vector<8x32xbf16>
    %c0_6 = arith.constant 0 : index
    %c0_7 = arith.constant 0 : index
    %c0_8 = arith.constant 0 : index
    %10 = vector.load %arg4[%c0_6, %c0_7, %c0_8] : memref<2x32x32xbf16, #tpu.memory_space<vmem>>, vector<1x32x32xbf16>
    %11 = vector.shape_cast %10 : vector<1x32x32xbf16> to vector<32x32xbf16>
    %cst_9 = arith.constant dense<0.000000e+00> : vector<8x32xf32>
    %12 = tpu.matmul %9, %11, %cst_9 {dimension_numbers = #tpu.dot_dimension_numbers<[1], [0], [0], [1], [0, 0, 1, 1], [], []>} : vector<8x32xbf16>, vector<32x32xbf16>, vector<8x32xf32> -> vector<8x32xf32>
    %c0_10 = arith.constant 0 : index
    %c0_11 = arith.constant 0 : index
    %c0_12 = arith.constant 0 : index
    %13 = vector.load %arg5[%c0_10, %c0_11, %c0_12] : memref<2x1x32xf32, #tpu.memory_space<vmem>>, vector<1x1x32xf32>
    %14 = vector.shape_cast %13 : vector<1x1x32xf32> to vector<1x32xf32>
    %15 = vector.broadcast %14 : vector<1x32xf32> to vector<8x32xf32>
    %16 = arith.addf %12, %15 : vector<8x32xf32>
    %cst_13 = arith.constant 0.000000e+00 : f32
    %17 = vector.broadcast %cst_13 : f32 to vector<8x32xf32>
    %18 = arith.maximumf %16, %17 : vector<8x32xf32>
    %19 = arith.truncf %18 : vector<8x32xf32> to vector<8x32xbf16>
    %c1 = arith.constant 1 : index
    %c0_14 = arith.constant 0 : index
    %c0_15 = arith.constant 0 : index
    %20 = vector.load %arg4[%c1, %c0_14, %c0_15] : memref<2x32x32xbf16, #tpu.memory_space<vmem>>, vector<1x32x32xbf16>
    %21 = vector.shape_cast %20 : vector<1x32x32xbf16> to vector<32x32xbf16>
    %cst_16 = arith.constant dense<0.000000e+00> : vector<8x32xf32>
    %22 = tpu.matmul %19, %21, %cst_16 {dimension_numbers = #tpu.dot_dimension_numbers<[1], [0], [0], [1], [0, 0, 1, 1], [], []>} : vector<8x32xbf16>, vector<32x32xbf16>, vector<8x32xf32> -> vector<8x32xf32>
    %c1_17 = arith.constant 1 : index
    %c0_18 = arith.constant 0 : index
    %c0_19 = arith.constant 0 : index
    %23 = vector.load %arg5[%c1_17, %c0_18, %c0_19] : memref<2x1x32xf32, #tpu.memory_space<vmem>>, vector<1x1x32xf32>
    %24 = vector.shape_cast %23 : vector<1x1x32xf32> to vector<1x32xf32>
    %25 = vector.broadcast %24 : vector<1x32xf32> to vector<8x32xf32>
    %26 = arith.addf %22, %25 : vector<8x32xf32>
    %cst_20 = arith.constant 0.000000e+00 : f32
    %27 = vector.broadcast %cst_20 : f32 to vector<8x32xf32>
    %28 = arith.maximumf %26, %27 : vector<8x32xf32>
    %29 = arith.truncf %28 : vector<8x32xf32> to vector<8x32xbf16>
    %c0_21 = arith.constant 0 : index
    %c0_22 = arith.constant 0 : index
    %30 = vector.load %arg6[%c0_21, %c0_22] : memref<32x8xbf16, #tpu.memory_space<vmem>>, vector<32x8xbf16>
    %cst_23 = arith.constant dense<0.000000e+00> : vector<8x8xf32>
    %31 = tpu.matmul %29, %30, %cst_23 {dimension_numbers = #tpu.dot_dimension_numbers<[1], [0], [0], [1], [0, 0, 1, 1], [], []>} : vector<8x32xbf16>, vector<32x8xbf16>, vector<8x8xf32> -> vector<8x8xf32>
    %c0_24 = arith.constant 0 : index
    %c0_25 = arith.constant 0 : index
    %32 = vector.load %arg7[%c0_24, %c0_25] : memref<1x8xf32, #tpu.memory_space<vmem>>, vector<1x8xf32>
    %33 = vector.broadcast %32 : vector<1x8xf32> to vector<8x8xf32>
    %34 = arith.addf %31, %33 : vector<8x8xf32>
    %c0_26 = arith.constant 0 : index
    %c0_27 = arith.constant 0 : index
    %35 = vector.load %arg8[%c0_26, %c0_27] : memref<8x8xf32, #tpu.memory_space<vmem>>, vector<8x8xf32>
    tpu.vector_store %arg8[%c0_26, %c0_27], %34 {strides = array<i32>} : memref<8x8xf32, #tpu.memory_space<vmem>>, vector<8x8xf32>,
    return
  }
  func.func @transform_0(%arg0: i32) -> (i32, i32) {
    %c0_i32 = arith.constant 0 : i32
    %c0_i32_0 = arith.constant 0 : i32
    return %arg0, %c0_i32 : i32, i32
  }
  func.func @transform_1(%arg0: i32) -> (i32, i32) {
    %c0_i32 = arith.constant 0 : i32
    %c0_i32_0 = arith.constant 0 : i32
    %c0_i32_1 = arith.constant 0 : i32
    return %c0_i32, %c0_i32_0 : i32, i32
  }
  func.func @transform_2(%arg0: i32) -> (i32, i32) {
    %c0_i32 = arith.constant 0 : i32
    %c0_i32_0 = arith.constant 0 : i32
    %c0_i32_1 = arith.constant 0 : i32
    return %c0_i32, %c0_i32_0 : i32, i32
  }
  func.func @transform_3(%arg0: i32) -> (i32, i32, i32) {
    %c0_i32 = arith.constant 0 : i32
    %c0_i32_0 = arith.constant 0 : i32
    %c0_i32_1 = arith.constant 0 : i32
    %c0_i32_2 = arith.constant 0 : i32
    return %c0_i32, %c0_i32_0, %c0_i32_1 : i32, i32, i32
  }
  func.func @transform_4(%arg0: i32) -> (i32, i32, i32) {
    %c0_i32 = arith.constant 0 : i32
    %c0_i32_0 = arith.constant 0 : i32
    %c0_i32_1 = arith.constant 0 : i32
    %c0_i32_2 = arith.constant 0 : i32
    return %c0_i32, %c0_i32_0, %c0_i32_1 : i32, i32, i32
  }
  func.func @transform_5(%arg0: i32) -> (i32, i32) {
    %c0_i32 = arith.constant 0 : i32
    %c0_i32_0 = arith.constant 0 : i32
    %c0_i32_1 = arith.constant 0 : i32
    return %c0_i32, %c0_i32_0 : i32, i32
  }
  func.func @transform_6(%arg0: i32) -> (i32, i32) {
    %c0_i32 = arith.constant 0 : i32
    %c0_i32_0 = arith.constant 0 : i32
    %c0_i32_1 = arith.constant 0 : i32
    return %c0_i32, %c0_i32_0 : i32, i32
  }
  func.func @transform_7(%arg0: i32) -> (i32, i32) {
    %c0_i32 = arith.constant 0 : i32
    %c0_i32_0 = arith.constant 0 : i32
    return %arg0, %c0_i32 : i32, i32
  }
}

</mosaic_0001>

<bundles_post_ra>
// kernel: tpu_custom_call.1
= control target key start
LH: loop header
LB: loop body
LE: loop exit
PB: predicated region body
PF: predicated region fallthrough
CT: control target
= control target key end

     0   :  { %12 = vsyncpa [#allocation3], 0  ;;  %s620_s0 = inlined_call_operand.hbm [shape: f32[8,28], index: 0, kind: input, shape index: {}]   ;;  %s621_s1 = inlined_call_operand.vmem [shape: bf16[28,32], index: 1, kind: input, shape index: {}]   ;;  %s622_s2 = inlined_call_operand.vmem [shape: f32[1,32], index: 2, kind: input, shape index: {}]   ;;  %s623_s3 = inlined_call_operand.hbm [shape: bf16[2,32,32], index: 3, kind: input, shape index: {}]   ;;  %s624_s4 = inlined_call_operand.vmem [shape: f32[2,1,32], index: 4, kind: input, shape index: {}]   ;;  %s625_s5 = inlined_call_operand.vmem [shape: bf16[32,8], index: 5, kind: input, shape index: {}]   ;;  %s626_s6 = inlined_call_operand.vmem [shape: f32[1,8], index: 6, kind: input, shape index: {}]   ;;  %s627_s7 = inlined_call_operand.hbm [shape: f32[8,8], index: 7, kind: output, shape index: {}]  }
   0x1   :  { %13 = vsyncpa [#allocation6], 0 }
   0x2   :  { %14 = vsyncpa [#allocation4], 0  ;;  %s499_s24 = smov [#allocation2]   ;;  %s500_s26 = smov [#allocation5]  }
   0x3   :  { %s21_s25 = sshll.u32 %s499_s24, 4  ;;  %s34_s27 = sshll.u32 %s500_s26, 4  ;;  %s22_s25 = int_to_ptr.vmem [resolvable:$true] %s21_s25  ;;  %s546_s27 = int_to_ptr.vmem [resolvable:$true] %s34_s27 }
   0x4   :  { %s427_s30 = scalar_lea.hbm %s620_s0, 128 }
   0x5   :  { %p428_p0 = scmp.ne.s32.totalorder %s620_s0, %s427_s30  ;;  %p431_p1 = scmp.lt.u32.totalorder %s427_s30, %s620_s0 }
   0x7   :  { %p433_p2 = pnand %p431_p1, %p428_p0 }
   0x9   :  { %436 = shalt.err (!%p433_p2)
}
   0xa   :  { %s437_s12 = scalar_lea.vmem %s22_s25, 128  ;;  %p442_p4 = scmp.lt.s32.totalorder %s22_s25, %s22_s25 }
   0xb   :  { %p438_p3 = scmp.ne.s32.totalorder %s22_s25, %s437_s12  ;;  %p443_p5 = scmp.lt.s32.totalorder %s437_s12, %s437_s12 }
   0xd   :  { %p444_p6 = por %p443_p5, %p442_p4 }
   0xf   :  { %p445_p7 = pnand %p444_p6, %p438_p3 }
  0x11   :  { %448 = shalt.err (!%p445_p7)
}
  0x12   :  { %24 = dma.hbm_to_vmem [thread:$0]  %s620_s0, 128, %s22_s25, [#allocation3]  }
  0x13   :  { %s449_s17 = scalar_lea.hbm %s623_s3, 512 }
  0x14   :  { %p450_p8 = scmp.ne.s32.totalorder %s623_s3, %s449_s17  ;;  %p453_p9 = scmp.lt.u32.totalorder %s449_s17, %s623_s3 }
  0x16   :  { %p455_p10 = pnand %p453_p9, %p450_p8 }
  0x18   :  { %458 = shalt.err (!%p455_p10)
}
  0x19   :  { %s459_s22 = scalar_lea.vmem %s546_s27, 512  ;;  %p464_p12 = scmp.lt.s32.totalorder %s546_s27, %s546_s27 }
  0x1a   :  { %p460_p11 = scmp.ne.s32.totalorder %s546_s27, %s459_s22  ;;  %p465_p13 = scmp.lt.s32.totalorder %s459_s22, %s459_s22 }
  0x1c   :  { %p466_p0 = por %p465_p13, %p464_p12 }
  0x1e   :  { %p467_p1 = pnand %p466_p0, %p460_p11 }
  0x20   :  { %470 = shalt.err (!%p467_p1)
}
  0x21   :  { %s501_s0 = smov 64   ;;  %s502_s23 = smov 4  }
  0x22   :  { %40 = dma.hbm_to_vmem [thread:$0]  %s623_s3, 512, %s546_s27, [#allocation6], %s501_s0, %s501_s0, %s502_s23  }
  0x23   :  { %493 = dma.done.wait [#allocation3], 128  }
  0x24   :  { %494 = vsyncadd [#allocation3], 4294967168 }
  0x25   :  { %495 = dma.done.wait [#allocation6], 512  }
  0x26   :  { %496 = vsyncadd [#allocation6], 4294966784  ;;  %v503_v0 = vmov 0.0   ;;  %vm504_vm0 = vmmov 0   ;;  %v419_v1 = vld [vmem:[%s621_s1] sm:$0xff]   ;;  %vm82_vm1 = vcmask 1045504  }
  0x27   :  { %380 = vmatprep.subr.bf16.mxu0 %v503_v0  ;;  %384 = vmatprep.mubr.msk.bf16.mxu0 %vm504_vm0, %v503_v0  ;;  %v420_v2 = vld [vmem:[%s621_s1 + $0x8] sm:$0x3f]   ;;  %v54_v3 = vld [vmem:[#allocation2] sm:$0xff]  ;;  %vm78_vm2 = vcmask 228352   ;;  %v422_v7 = vld [vmem:[#allocation5 + $0x8] sm:$0xff]   ;;  %vm151_vm3 = vcmask 261120  }
  0x28   :  { %388 = vmatprep.subr.bf16.mxu1 %v503_v0  ;;  %392 = vmatprep.mubr.msk.bf16.mxu1 %vm504_vm0, %v503_v0  ;;  %v84_v4 = vsel %vm82_vm1, %v420_v2, 0  ;;  %v55_v5 = vpack.c.bf16 %v54_v3, %v54_v3  ;;  %v421_v6 = vld [vmem:[#allocation5] sm:$0xff]   ;;  %v423_v8 = vld [vmem:[#allocation5 + $0x10] sm:$0xff]   ;;  %v351_v9 = vld [vmem:[%s622_s2] ss:$0 sm:$0xff]  ;;  %s505_s16 = smov [#allocation7]  }
  0x29   :  { %381 = vmatpush3.bf16.msra.mxu0 %v419_v1  ;;  %389 = vmatpush3.bf16.msra.mxu1 %v421_v6  ;;  %v424_v17 = vld [vmem:[#allocation5 + $0x18] sm:$0xff]   ;;  %v426_v27 = vld [vmem:[%s625_s5 + $0x8] sm:$0xff]   ;;  %vm333_vm4 = vcmask 64512  }
  0x2a   :  { %382 = vmatprep.subr.bf16.mxu0 %v503_v0  ;;  %390 = vmatprep.subr.bf16.mxu1 %v503_v0  ;;  %v425_v18 = vld [vmem:[%s625_s5] sm:$0xff]   ;;  %s341_s5 = sshll.u32 %s505_s16, 4  ;;  %s342_s5 = int_to_ptr.vmem [resolvable:$true] %s341_s5 }
  0x2b   :  { %v355_v19 = vld [vmem:[%s624_s4] ss:$0 sm:$0xff]  ;;  %v360_v28 = vld [vmem:[%s624_s4 + $0x1] ss:$0 sm:$0xff]  ;;  %s471_s4 = scalar_lea.vmem %s342_s5, 128  ;;  %p476_p3 = scmp.lt.s32.totalorder %s342_s5, %s342_s5 }
  0x2c   :  { %v364_v36 = vld [vmem:[%s626_s6] ss:$0 sm:$0xff]  ;;  %p472_p2 = scmp.ne.s32.totalorder %s342_s5, %s471_s4  ;;  %p477_p4 = scmp.lt.s32.totalorder %s471_s4, %s471_s4 }
  0x2d   :  { %383 = vmatpush3.bf16.msra.mxu0 %v84_v4  ;;  %391 = vmatpush3.bf16.msra.mxu1 %v422_v7 }
  0x2e   :  { %396 = vmatprep.subr.bf16.mxu0 %v503_v0  ;;  %404 = vmatprep.subr.bf16.mxu1 %v503_v0  ;;  %p478_p5 = por %p477_p4, %p476_p3 }
  0x30   :  { %385 = vmatmul.mubr.msk.bf16.vlgmr.msra.gmra.mrb[0].mxu0 %vm78_vm2, %v55_v5  ;;  %p479_p6 = pnand %p478_p5, %p472_p2 }
  0x31   :  { %400 = vmatprep.mubr.msk.bf16.mxu0 %vm504_vm0, %v503_v0  ;;  %397 = vmatpush3.bf16.msra.mxu0 %v423_v8 }
  0x32   :  { %398 = vmatprep.subr.bf16.mxu0 %v503_v0 }
  0x35   :  { %399 = vmatpush3.bf16.msra.mxu0 %v424_v17 }
 0x103   :  { %v120_v10 = vpop.f32.mrb[0].mxu0 }
 0x104   :  { %v121_v11 = vadd.f32 %v351_v9, %v120_v10  ;;  %v386_v12 = vpop.f32.mrb[1].mxu0 }
 0x105   :  { %v123_v13 = vpop.f32.mrb[2].mxu0 }
 0x106   :  { %v126_v14 = vmax.f32 %v121_v11, 0.0  ;;  %v387_v15 = vpop.f32.mrb[3].mxu0 }
 0x108   :  { %v127_v16 = vpack.c.bf16 %v126_v14, %v126_v14 }
 0x10a   :  { %393 = vmatmul.mubr.msk.bf16.vlgmr.msra.gmra.mrb[0].mxu1 %vm151_vm3, %v127_v16 }
 0x10b   :  { %408 = vmatprep.mubr.msk.bf16.mxu1 %vm504_vm0, %v503_v0  ;;  %405 = vmatpush3.bf16.msra.mxu1 %v425_v18 }
 0x10c   :  { %406 = vmatprep.subr.bf16.mxu1 %v503_v0 }
 0x10f   :  { %407 = vmatpush3.bf16.msra.mxu1 %v426_v27 }
 0x1dd   :  { %v189_v20 = vpop.f32.mrb[0].mxu1 }
 0x1de   :  { %v190_v21 = vadd.f32 %v355_v19, %v189_v20  ;;  %v394_v22 = vpop.f32.mrb[1].mxu1 }
 0x1df   :  { %v192_v23 = vpop.f32.mrb[2].mxu1 }
 0x1e0   :  { %v195_v24 = vmax.f32 %v190_v21, 0.0  ;;  %v395_v25 = vpop.f32.mrb[3].mxu1 }
 0x1e2   :  { %v196_v26 = vpack.c.bf16 %v195_v24, %v195_v24 }
 0x1e4   :  { %401 = vmatmul.mubr.msk.bf16.vlgmr.msra.gmra.mrb[4].mxu0 %vm151_vm3, %v196_v26 }
 0x2b7   :  { %v259_v29 = vpop.f32.mrb[4].mxu0 }
 0x2b8   :  { %v260_v30 = vadd.f32 %v360_v28, %v259_v29  ;;  %v402_v31 = vpop.f32.mrb[5].mxu0 }
 0x2b9   :  { %v262_v32 = vpop.f32.mrb[6].mxu0 }
 0x2ba   :  { %v265_v33 = vmax.f32 %v260_v30, 0.0  ;;  %v403_v34 = vpop.f32.mrb[7].mxu0 }
 0x2bc   :  { %v266_v35 = vpack.c.bf16 %v265_v33, %v265_v33 }
 0x2be   :  { %409 = vmatmul.mubr.msk.bf16.vlgmr.msra.gmra.mrb[4].mxu1 %vm151_vm3, %v266_v35 }
 0x391   :  { %v327_v37 = vpop.f32.mrb[4].mxu1 }
 0x392   :  { %v328_v38 = vadd.f32 %v364_v36, %v327_v37  ;;  %v410_v39 = vpop.f32.mrb[5].mxu1 }
 0x393   :  { %v330_v40 = vpop.f32.mrb[6].mxu1 }
 0x394   :  { %v411_v41 = vpop.f32.mrb[7].mxu1  ;;  %334 = vst.msk [vmem:[#allocation7] sm:$0xff] %vm333_vm4, %v328_v38 }
 0x395   :  { %482 = shalt.err (!%p479_p6)
}
 0x396   :  { %s483_s6 = scalar_lea.hbm %s627_s7, 128 }
 0x397   :  { %p484_p7 = scmp.ne.s32.totalorder %s627_s7, %s483_s6  ;;  %p487_p8 = scmp.lt.u32.totalorder %s483_s6, %s627_s7 }
 0x399   :  { %p489_p9 = pnand %p487_p8, %p484_p7 }
 0x39b   :  { %492 = shalt.err (!%p489_p9)
}
 0x39c   :  { %344 = dma.vmem_to_hbm [thread:$0]  %s342_s5, 128, %s627_s7, [#allocation4]  }
 0x39d   :  { %497 = dma.done.wait [#allocation4], 128  }
 0x39e   :  { %498 = vsyncadd [#allocation4], 4294967168 }
 0x39f   :  { %348 = vsyncpa [#allocation3], 1 }
 0x3a0   :  { %349 = vsyncpa [#allocation6], 1 }
 0x3a1   :  { %350 = vsyncpa [#allocation4], 1 }

</bundles_post_ra>
